<compile_context>
chip_gen: v7x
topology: tpu7x:2x2x1
jax: 0.10.0
libtpu: 0.0.40
codegen_flags: <defaults>
</compile_context>

<pallas_src>
import functools

import jax
import jax.numpy as jnp
from jax.experimental import pallas as pl
from jax.experimental.pallas import tpu as pltpu

_TAP = 0.3    # conv.weight.data.fill_(0.3)  (all nine 3x3 taps)
_BIAS = 0.2   # conv.bias.data.fill_(0.2)


def _box3x3_kernel(x_ref, o_ref, *, H, W, n_pad):
    """Fused pad + 3x3 box conv (taps 0.3) + bias on Bt flattened images.

    x_ref, o_ref: (Bt, n_pad) float32 in VMEM; the first H*W lanes of each row
    hold one image in row-major order (flat = h*W + w), the rest is padding.
    """
    n = H * W
    x = x_ref[...]                                      # (Bt, n_pad) f32

    # ---- lane-only border keep-masks, built once as (1, n_pad) f32 ---------
    # (no (Bt, n) int32 temporaries, no per-element div/mod on the data tile)
    lane = jax.lax.broadcasted_iota(jnp.int32, (1, n_pad), 1)
    if (W & (W - 1)) == 0:                              # power-of-two width
        col = lane & (W - 1)
    else:
        col = lane % W
    f32 = x.dtype
    keep_left = (col != 0).astype(f32)                  # w > 0   -> left ok
    keep_right = (col != W - 1).astype(f32)             # w < W-1 -> right ok
    keep_up = (lane >= W).astype(f32)                   # h > 0   -> up ok
    keep_down = (lane < n - W).astype(f32)              # h < H-1 -> down ok

    # ---- horizontal 3-tap sum (zero padding: roll wrap-around is masked) ---
    # roll(x, n_pad - 1) == roll(x, -1): same single lane-rotate either way.
    left = pltpu.roll(x, 1, axis=1) * keep_left
    right = pltpu.roll(x, n_pad - 1, axis=1) * keep_right
    row3 = x + left + right

    # ---- vertical 3-tap sum of the row sums (shift by one image row) -------
    up = pltpu.roll(row3, W, axis=1) * keep_up
    down = pltpu.roll(row3, n_pad - W, axis=1) * keep_down

    o_ref[...] = _TAP * (row3 + up + down) + _BIAS


def _vmem_plan():
    """Generation-aware (block_budget_bytes, vmem_limit_bytes)."""
    default_vmem = 128 * 1024 * 1024
    try:
        vmem = int(getattr(pltpu.get_tpu_info(), "vmem_capacity_bytes",
                           default_vmem))
    except Exception:  # no TPU info available at trace time -> be conservative
        vmem = 64 * 1024 * 1024
    if vmem <= 64 * 1024 * 1024:
        # v7x-class: 64 MiB physical VMEM per TensorCore -> keep the
        # double-buffered in+out footprint and the scoped limit well under it.
        return 32 * 1024 * 1024, 48 * 1024 * 1024
    # v5e / v6e: 128 MiB VMEM -> larger scoped limit, same multi-MiB blocks.
    return 32 * 1024 * 1024, 64 * 1024 * 1024


def _pick_block_b(batch, n_elems, *, budget_bytes):
    """Images per grid step.

    Prefer the largest multiple-of-8 divisor of `batch` whose double-buffered
    f32 in+out blocks fit `budget_bytes` while leaving >= 4 grid steps when the
    batch allows (real double-buffering on v5e/v6e, >= 2 steps per TensorCore
    on v7x).  If no multiple-of-8 divisor fits, fall back to the largest
    divisor of `batch` that still fits the budget (down to one image/step).
    """
    per_img = n_elems * 4 * 2 * 2          # f32, in + out, double-buffered
    cap = max(1, budget_bytes // per_img)
    limit = min(cap, max(8, batch // 4))   # aim for >= 4 steps when possible
    best = 0
    d = 8
    while d <= limit:
        if batch % d == 0:
            best = d
        d += 8
    if best:
        return best
    # Fallback: largest budget-fitting divisor of batch (never the whole batch
    # unless it actually fits), down to 1 image per step.
    d = min(batch, cap)
    while d > 1:
        if batch % d == 0:
            return d
        d -= 1
    return 1


def conv3x3_box_flat(x_flat, H, W, *, block_b=None):
    """0.3-box 3x3 'same' conv + 0.2 bias on (B, H*W) row-major images."""
    B, n = x_flat.shape
    assert n == H * W
    # Keep the last (lane) dim a multiple of 128 so loads/stores are unmasked.
    n_pad = ((n + 127) // 128) * 128
    if n_pad != n:
        x_flat = jnp.pad(x_flat, ((0, 0), (0, n_pad - n)))

    budget_bytes, vmem_limit = _vmem_plan()
    bt = (block_b if block_b is not None
          else _pick_block_b(B, n_pad, budget_bytes=budget_bytes))
    assert B % bt == 0, (B, bt)

    kernel = functools.partial(_box3x3_kernel, H=H, W=W, n_pad=n_pad)
    out = pl.pallas_call(
        kernel,
        out_shape=jax.ShapeDtypeStruct((B, n_pad), jnp.float32),
        grid=(B // bt,),
        in_specs=[pl.BlockSpec((bt, n_pad), lambda b: (b, 0))],
        out_specs=pl.BlockSpec((bt, n_pad), lambda b: (b, 0)),
        compiler_params=pltpu.CompilerParams(
            dimension_semantics=("parallel",),
            vmem_limit_bytes=vmem_limit,
        ),
    )(x_flat)
    return out[:, :n] if n_pad != n else out


def model_forward(x_nchw):
    """Matches Model.forward: Conv2d(1,1,3,pad=1, w=0.3, b=0.2) -> view(B,-1)."""
    B, C, H, W = x_nchw.shape
    assert C == 1, "module is Conv2d(1, 1, ...)"
    # Row-major flatten is a free bitcast, matches torch's .view(B, -1), and
    # makes the kernel blocks lane-dense (H*W = 256 lanes for the 16x16 test).
    x_flat = x_nchw.reshape(B, H * W).astype(jnp.float32)
    return conv3x3_box_flat(x_flat, H, W)


def _reference_forward(x_nchw):
    """Pure-JAX reference (XLA conv) for correctness checking."""
    w = jnp.full((1, 1, 3, 3), 0.3, dtype=jnp.float32)
    b = jnp.full((1,), 0.2, dtype=jnp.float32)
    y = jax.lax.conv_general_dilated(
        x_nchw.astype(jnp.float32), w, window_strides=(1, 1),
        padding=((1, 1), (1, 1)),
        dimension_numbers=("NCHW", "OIHW", "NCHW"))
    y = y + b.reshape(1, 1, 1, 1)
    return y.reshape(y.shape[0], -1)


if __name__ == "__main__":
    key = jax.random.PRNGKey(0)
    # Small shapes consistent with the module: batch=2, C=1, spatial=16.
    x = jax.random.normal(key, (2, 1, 16, 16), dtype=jnp.float32)

    out = jax.block_until_ready(model_forward(x))
    ref = jax.block_until_ready(_reference_forward(x))

    assert out.shape == (2, 256), out.shape
    assert jnp.allclose(out, ref, atol=1e-5, rtol=1e-5), "mismatch vs reference"
    print("KERNEL_OK")
</pallas_src>

<mosaic_0001>
module attributes {stable_mosaic.version = 11 : i64} {
  func.func @_box3x3_kernel(%arg0: i32, %arg1: memref<2x256xf32, #tpu.memory_space<vmem>>, %arg2: memref<2x256xf32, #tpu.memory_space<vmem>>) attributes {dimension_semantics = [#tpu.dimension_semantics<parallel>], iteration_bounds = array<i64: 1>, scalar_prefetch = 0 : i64, scratch_operands = 0 : i64, tpu.core_type = #tpu.core_type<tc>, window_params = [{transform_indices = @transform_0, window_bounds = array<i64: 2, 256>}, {transform_indices = @transform_1, window_bounds = array<i64: 2, 256>}]} {
    %c0 = arith.constant 0 : index
    %c0_0 = arith.constant 0 : index
    %0 = vector.load %arg1[%c0, %c0_0] : memref<2x256xf32, #tpu.memory_space<vmem>>, vector<2x256xf32>
    %1 = tpu.iota {dimensions = array<i32: 1>} : vector<1x256xi32>
    %c15_i32 = arith.constant 15 : i32
    %2 = vector.broadcast %c15_i32 : i32 to vector<1x256xi32>
    %3 = arith.andi %1, %2 : vector<1x256xi32>
    %c0_i32 = arith.constant 0 : i32
    %4 = vector.broadcast %c0_i32 : i32 to vector<1x256xi32>
    %5 = arith.cmpi ne, %3, %4 : vector<1x256xi32>
    %6 = arith.extui %5 : vector<1x256xi1> to vector<1x256xi32>
    %7 = arith.sitofp %6 : vector<1x256xi32> to vector<1x256xf32>
    %c15_i32_1 = arith.constant 15 : i32
    %8 = vector.broadcast %c15_i32_1 : i32 to vector<1x256xi32>
    %9 = arith.cmpi ne, %3, %8 : vector<1x256xi32>
    %10 = arith.extui %9 : vector<1x256xi1> to vector<1x256xi32>
    %11 = arith.sitofp %10 : vector<1x256xi32> to vector<1x256xf32>
    %c16_i32 = arith.constant 16 : i32
    %12 = vector.broadcast %c16_i32 : i32 to vector<1x256xi32>
    %13 = arith.cmpi sge, %1, %12 : vector<1x256xi32>
    %14 = arith.extui %13 : vector<1x256xi1> to vector<1x256xi32>
    %15 = arith.sitofp %14 : vector<1x256xi32> to vector<1x256xf32>
    %c240_i32 = arith.constant 240 : i32
    %16 = vector.broadcast %c240_i32 : i32 to vector<1x256xi32>
    %17 = arith.cmpi slt, %1, %16 : vector<1x256xi32>
    %18 = arith.extui %17 : vector<1x256xi1> to vector<1x256xi32>
    %19 = arith.sitofp %18 : vector<1x256xi32> to vector<1x256xf32>
    %c1_i32 = arith.constant 1 : i32
    %20 = tpu.dynamic_rotate %0 by %c1_i32 dim 1 : vector<2x256xf32>, i32 -> vector<2x256xf32>
    %21 = vector.broadcast %7 : vector<1x256xf32> to vector<2x256xf32>
    %22 = arith.mulf %20, %21 : vector<2x256xf32>
    %c255_i32 = arith.constant 255 : i32
    %23 = tpu.dynamic_rotate %0 by %c255_i32 dim 1 : vector<2x256xf32>, i32 -> vector<2x256xf32>
    %24 = vector.broadcast %11 : vector<1x256xf32> to vector<2x256xf32>
    %25 = arith.mulf %23, %24 : vector<2x256xf32>
    %26 = arith.addf %0, %22 : vector<2x256xf32>
    %27 = arith.addf %26, %25 : vector<2x256xf32>
    %c16_i32_2 = arith.constant 16 : i32
    %28 = tpu.dynamic_rotate %27 by %c16_i32_2 dim 1 : vector<2x256xf32>, i32 -> vector<2x256xf32>
    %29 = vector.broadcast %15 : vector<1x256xf32> to vector<2x256xf32>
    %30 = arith.mulf %28, %29 : vector<2x256xf32>
    %c240_i32_3 = arith.constant 240 : i32
    %31 = tpu.dynamic_rotate %27 by %c240_i32_3 dim 1 : vector<2x256xf32>, i32 -> vector<2x256xf32>
    %32 = vector.broadcast %19 : vector<1x256xf32> to vector<2x256xf32>
    %33 = arith.mulf %31, %32 : vector<2x256xf32>
    %34 = arith.addf %27, %30 : vector<2x256xf32>
    %35 = arith.addf %34, %33 : vector<2x256xf32>
    %cst = arith.constant 3.000000e-01 : f32
    %36 = vector.broadcast %cst : f32 to vector<2x256xf32>
    %37 = arith.mulf %36, %35 : vector<2x256xf32>
    %cst_4 = arith.constant 2.000000e-01 : f32
    %38 = vector.broadcast %cst_4 : f32 to vector<2x256xf32>
    %39 = arith.addf %37, %38 : vector<2x256xf32>
    %c0_5 = arith.constant 0 : index
    %c0_6 = arith.constant 0 : index
    %40 = vector.load %arg2[%c0_5, %c0_6] : memref<2x256xf32, #tpu.memory_space<vmem>>, vector<2x256xf32>
    tpu.vector_store %arg2[%c0_5, %c0_6], %39 {strides = array<i32>} : memref<2x256xf32, #tpu.memory_space<vmem>>, vector<2x256xf32>,
    return
  }
  func.func @transform_0(%arg0: i32) -> (i32, i32) {
    %c0_i32 = arith.constant 0 : i32
    %c0_i32_0 = arith.constant 0 : i32
    return %arg0, %c0_i32 : i32, i32
  }
  func.func @transform_1(%arg0: i32) -> (i32, i32) {
    %c0_i32 = arith.constant 0 : i32
    %c0_i32_0 = arith.constant 0 : i32
    return %arg0, %c0_i32 : i32, i32
  }
}

</mosaic_0001>

<bundles_post_ra>
// kernel: tpu_custom_call.1
= control target key start
LH: loop header
LB: loop body
LE: loop exit
PB: predicated region body
PF: predicated region fallthrough
CT: control target
= control target key end

     0   :  { %6 = vsyncpa [#allocation3], 0  ;;  %s287_s0 = inlined_call_operand.hbm [shape: f32[2,256], index: 0, kind: input, shape index: {}]   ;;  %s288_s1 = inlined_call_operand.hbm [shape: f32[2,256], index: 1, kind: output, shape index: {}]  }
   0x1   :  { %7 = vsyncpa [#allocation4], 0  ;;  %s237_s6 = smov [#allocation2]   ;;  %s189_s10 = scalar_lea.hbm %s287_s0, 64 }
   0x2   :  { %s14_s7 = sshll.u32 %s237_s6, 4  ;;  %p190_p0 = scmp.ne.s32.totalorder %s287_s0, %s189_s10  ;;  %s15_s7 = int_to_ptr.vmem [resolvable:$true] %s14_s7 }
   0x3   :  { %p193_p1 = scmp.lt.u32.totalorder %s189_s10, %s287_s0 }
   0x5   :  { %p195_p2 = pnand %p193_p1, %p190_p0 }
   0x7   :  { %198 = shalt.err (!%p195_p2)
}
   0x8   :  { %s199_s15 = scalar_lea.vmem %s15_s7, 64  ;;  %p204_p4 = scmp.lt.s32.totalorder %s15_s7, %s15_s7 }
   0x9   :  { %p200_p3 = scmp.ne.s32.totalorder %s15_s7, %s199_s15  ;;  %p205_p5 = scmp.lt.s32.totalorder %s199_s15, %s199_s15 }
   0xb   :  { %p206_p6 = por %p205_p5, %p204_p4 }
   0xd   :  { %p207_p7 = pnand %p206_p6, %p200_p3 }
   0xf   :  { %210 = shalt.err (!%p207_p7)
}
  0x10   :  { %17 = dma.hbm_to_vmem [thread:$0]  %s287_s0, 64, %s15_s7, [#allocation3]  }
  0x11   :  { %233 = dma.done.wait [#allocation3], 64  }
  0x12   :  { %234 = vsyncadd [#allocation3], 4294967232  ;;  %v22_v0 = vlaneseq  ;;  %v238_v1 = vmov 1983009808   ;;  %v21_v6 = vld [vmem:[#allocation2] sm:$0xf] }
  0x13   :  { %v53_v2 = vunpack.c.l.s4 %v238_v1  ;;  %s239_s18 = smov 127   ;;  %s240_s19 = smov 1   ;;  %v241_v15 = vmov 0.0  }
  0x14   :  { %v56_v3 = vshrl.u32 %v22_v0, 7  ;;  %v23_v9 = vand.u32 127, %v22_v0  ;;  %s242_s0 = smov 16   ;;  %s243_s20 = smov 112  }
  0x15   :  { %v54_v4 = vunpack.c.0.s8 %v53_v2  ;;  %s244_s21 = smov [#allocation5]  }
  0x16   :  { %v24_v10 = vadd.s32 128, %v23_v9  ;;  %v25_v11 = vand.u32 15, %v23_v9  ;;  %vm75_vm4 = vcmp.lt.s32.totalorder %v23_v9, 127  ;;  %vm66_vm5 = vcmp.lt.s32.totalorder %v23_v9, 1  ;;  %s166_s22 = sshll.u32 %s244_s21, 4  ;;  %s167_s22 = int_to_ptr.vmem [resolvable:$true] %s166_s22 }
  0x17   :  { %v267_v5 = vsub.s32 %v54_v4, %v56_v3  ;;  %vm39_vm6 = vcmp.ge.s32.totalorder %v23_v9, 16  ;;  %vm119_vm7 = vcmp.lt.s32.totalorder %v23_v9, 16  ;;  %vm128_vm9 = vcmp.lt.s32.totalorder %v23_v9, 112  ;;  %s211_s23 = scalar_lea.vmem %s167_s22, 64  ;;  %p216_p9 = scmp.lt.s32.totalorder %s167_s22, %s167_s22 }
  0x18   :  { %v26_v12 = vand.u32 15, %v24_v10  ;;  %vm33_vm0 = vcmp.ne.s32.totalorder %v25_v11, 15  ;;  %vm27_vm2 = vcmp.ne.s32.totalorder %v25_v11, 0  ;;  %v179_v39 = vsel %vm39_vm6, 1.0, %v241_v15  ;;  %p212_p8 = scmp.ne.s32.totalorder %s167_s22, %s211_s23  ;;  %p217_p10 = scmp.lt.s32.totalorder %s211_s23, %s211_s23 }
  0x19   :  { %v58_v7 = vrot.slane %v21_v6, %v267_v5  ;;  %v177_v16 = vsel %vm33_vm0, 1.0, %v241_v15  ;;  %v175_v18 = vsel %vm27_vm2, 1.0, %v241_v15  ;;  %vm46_vm8 = vcmp.lt.s32.totalorder %v24_v10, 240 }
  0x1a   :  { %vm34_vm1 = vcmp.ne.s32.totalorder %v26_v12, 15  ;;  %vm28_vm3 = vcmp.ne.s32.totalorder %v26_v12, 0  ;;  %v180_v44 = vsel %vm46_vm8, 1.0, %v241_v15  ;;  %p218_p11 = por %p217_p10, %p216_p9 }
  0x1b   :  { %71 = vrot.lane.b32.xlu1 %v58_v7, %s239_s18  ;;  %62 = vrot.lane.b32.xlu0 %v58_v7, %s240_s19  ;;  %v59_v8 = vcombine.high %v58_v7, %v58_v7  ;;  %v178_v17 = vsel %vm34_vm1, 1.0, %v241_v15  ;;  %v176_v19 = vsel %vm28_vm3, 1.0, %v241_v15 }
  0x1c   :  { %p219_p12 = pnand %p218_p11, %p212_p8 }
  0x1f   :  { %73 = vrot.lane.b32.xlu1 %v59_v8, %s239_s18  ;;  %64 = vrot.lane.b32.xlu0 %v59_v8, %s240_s19 }
  0x8d   :  { %v72_v13 = vpop.permute.xlu1 %71  ;;  %v63_v14 = vpop.permute.xlu0 %62 }
  0x91   :  { %v74_v20 = vpop.permute.xlu1 %73  ;;  %v65_v21 = vpop.permute.xlu0 %64 }
  0x92   :  { %v76_v22 = vsel %vm75_vm4, %v72_v13, %v74_v20  ;;  %v77_v23 = vsel %vm75_vm4, %v74_v20, %v72_v13  ;;  %v67_v24 = vsel %vm66_vm5, %v63_v14, %v65_v21  ;;  %v68_v25 = vsel %vm66_vm5, %v65_v21, %v63_v14 }
  0x93   :  { %v78_v26 = vmul.f32 %v177_v16, %v76_v22  ;;  %v79_v27 = vmul.f32 %v178_v17, %v77_v23  ;;  %v69_v28 = vmul.f32 %v175_v18, %v68_v25  ;;  %v70_v29 = vmul.f32 %v176_v19, %v67_v24 }
  0x95   :  { %v94_v30 = vcombine.low %v78_v26, %v79_v27  ;;  %v82_v31 = vcombine.low %v69_v28, %v70_v29 }
  0x97   :  { %v89_v32 = vrot.slane %v82_v31, %v267_v5  ;;  %v101_v33 = vrot.slane %v94_v30, %v267_v5 }
  0x99   :  { %v91_v34 = vadd.f32 %v89_v32, %v21_v6 }
  0x9b   :  { %v103_v35 = vadd.f32 %v101_v33, %v91_v34 }
  0x9d   :  { %v111_v36 = vrot.slane %v103_v35, %v267_v5 }
  0x9f   :  { %115 = vrot.lane.b32.xlu0 %v111_v36, %s242_s0  ;;  %v112_v37 = vcombine.high %v111_v36, %v111_v36 }
  0xa1   :  { %117 = vrot.lane.b32.xlu1 %v112_v37, %s242_s0 }
  0xa3   :  { %124 = vrot.lane.b32.xlu0 %v111_v36, %s243_s20 }
  0xa5   :  { %126 = vrot.lane.b32.xlu1 %v112_v37, %s243_s20 }
 0x111   :  { %v116_v38 = vpop.permute.xlu0 %115 }
 0x113   :  { %v118_v40 = vpop.permute.xlu1 %117 }
 0x114   :  { %v121_v41 = vsel %vm119_vm7, %v118_v40, %v116_v38  ;;  %v120_v43 = vsel %vm119_vm7, %v116_v38, %v118_v40 }
 0x115   :  { %v122_v42 = vmul.f32 %v179_v39, %v121_v41  ;;  %v125_v46 = vpop.permute.xlu0 %124 }
 0x117   :  { %v135_v45 = vcombine.low %v122_v42, %v120_v43  ;;  %v127_v47 = vpop.permute.xlu1 %126 }
 0x118   :  { %v130_v48 = vsel %vm128_vm9, %v127_v47, %v125_v46  ;;  %v129_v51 = vsel %vm128_vm9, %v125_v46, %v127_v47 }
 0x119   :  { %v142_v49 = vrot.slane %v135_v45, %v267_v5  ;;  %v132_v50 = vmul.f32 %v180_v44, %v130_v48 }
 0x11b   :  { %v147_v52 = vcombine.low %v129_v51, %v132_v50  ;;  %v144_v54 = vadd.f32 %v142_v49, %v103_v35 }
 0x11d   :  { %v154_v53 = vrot.slane %v147_v52, %v267_v5 }
 0x11f   :  { %v156_v55 = vadd.f32 %v154_v53, %v144_v54 }
 0x121   :  { %v157_v56 = vmul.f32 0.3, %v156_v55 }
 0x123   :  { %v158_v57 = vadd.f32 0.2, %v157_v56 }
 0x125   :  { %159 = vst [vmem:[#allocation5] sm:$0xf] %v158_v57 }
 0x126   :  { %222 = shalt.err (!%p219_p12)
}
 0x127   :  { %s223_s26 = scalar_lea.hbm %s288_s1, 64 }
 0x128   :  { %p224_p13 = scmp.ne.s32.totalorder %s288_s1, %s223_s26  ;;  %p227_p0 = scmp.lt.u32.totalorder %s223_s26, %s288_s1 }
 0x12a   :  { %p229_p1 = pnand %p227_p0, %p224_p13 }
 0x12c   :  { %232 = shalt.err (!%p229_p1)
}
 0x12d   :  { %169 = dma.vmem_to_hbm [thread:$0]  %s167_s22, 64, %s288_s1, [#allocation4]  }
 0x12e   :  { %235 = dma.done.wait [#allocation4], 64  }
 0x12f   :  { %236 = vsyncadd [#allocation4], 4294967232 }
 0x130   :  { %173 = vsyncpa [#allocation3], 1 }
 0x131   :  { %174 = vsyncpa [#allocation4], 1 }

</bundles_post_ra>
